<compile_context>
chip_gen: v6e
topology: v6e:2x2x1
jax: 0.10.0
libtpu: 0.0.40
codegen_flags: <defaults>
</compile_context>

<pallas_src>
import numpy as np
import jax
import jax.numpy as jnp
from jax.experimental import pallas as pl
from jax.experimental.pallas import tpu as pltpu

# ----------------------------- sizes -----------------------------
B = 2                       # graphs per batch
N_REG = 5                   # regular (un-weighted) nodes per graph
N_WTD = 3                   # weighted nodes per graph
N = N_REG + N_WTD           # total (padded) nodes per graph
BN = B * N                  # flattened node count
VOCAB = 16                  # op-type vocabulary size
S = 6                       # shape feature length
KF = 3                      # kernel features (kh, kw) + bias flag
D_OP, D_SH, D_K = 16, 8, 8
D_IN = D_OP + D_SH + D_K    # 32 : node embedding dim
F_IN = VOCAB + S + KF       # 25 : fused raw node-feature width
H = 32                      # GNN hidden dim


# ----------------------------- fused kernel -----------------------------
def fused_cgraph_kernel(last_idx_ref,                       # SMEM [B] int32 (scalar prefetch)
                        feat_ref, adj_ref,                  # [BN, F_IN], [BN, BN]
                        wemb_ref, bemb_ref,                 # [F_IN, D_IN], [1, D_IN]
                        w1_ref, b1_ref,                     # [2*D_IN, H], [1, H]
                        w2_ref, b2_ref,                     # [2*H, H],   [1, H]
                        out_ref):                           # [B, H]
    feat = feat_ref[...]
    adj = adj_ref[...]

    # row-normalized adjacency; degree clipped at 1 so isolated/padded nodes get msg = 0
    deg = jnp.sum(adj, axis=-1, keepdims=True)
    adj_n = adj * pl.reciprocal(jnp.maximum(deg, 1.0), approx=False)

    # --- embed_layer: one block-diagonal matmul ([op one-hot | shape | kernel+bias] feats)
    x = jnp.dot(feat, wemb_ref[...], preferred_element_type=jnp.float32) + bemb_ref[...]

    # --- encoder: 2-layer GraphSAGE, self/neighbor weights stacked -> one matmul per layer
    msg1 = jnp.dot(adj_n, x, preferred_element_type=jnp.float32)
    h1 = (jnp.dot(jnp.concatenate([x, msg1], axis=-1), w1_ref[...],
                  preferred_element_type=jnp.float32) + b1_ref[...])
    h1 = jnp.maximum(h1, 0.0)

    msg2 = jnp.dot(adj_n, h1, preferred_element_type=jnp.float32)
    h2 = (jnp.dot(jnp.concatenate([h1, msg2], axis=-1), w2_ref[...],
                  preferred_element_type=jnp.float32) + b2_ref[...])
    h2 = jnp.maximum(h2, 0.0)                               # [BN, H]

    # --- aggregator: masked mean over each graph's valid nodes (mask built from SMEM scalars)
    row_id = jax.lax.broadcasted_iota(jnp.int32, (BN, H), 0)
    rows = []
    for b in range(B):                                      # B is tiny & static -> unrolled
        last = last_idx_ref[b]
        lo = b * N
        valid = jnp.logical_and(row_id >= lo, row_id <= lo + last)
        cnt = (last + 1).astype(jnp.float32)
        m = valid.astype(jnp.float32) * (1.0 / cnt)
        rows.append(jnp.sum(h2 * m, axis=0, keepdims=True))  # [1, H] mean of graph b
    out_ref[...] = jnp.concatenate(rows, axis=0)            # [B, H]


def _call_fused(last_idx, feat, adj, fp):
    grid_spec = pltpu.PrefetchScalarGridSpec(
        num_scalar_prefetch=1,
        grid=(1,),                                          # single step: whole batch fits a vreg-scale tile
        in_specs=[
            pl.BlockSpec((BN, F_IN), lambda i, last: (0, 0)),
            pl.BlockSpec((BN, BN), lambda i, last: (0, 0)),
            pl.BlockSpec((F_IN, D_IN), lambda i, last: (0, 0)),
            pl.BlockSpec((1, D_IN), lambda i, last: (0, 0)),
            pl.BlockSpec((2 * D_IN, H), lambda i, last: (0, 0)),
            pl.BlockSpec((1, H), lambda i, last: (0, 0)),
            pl.BlockSpec((2 * H, H), lambda i, last: (0, 0)),
            pl.BlockSpec((1, H), lambda i, last: (0, 0)),
        ],
        out_specs=pl.BlockSpec((B, H), lambda i, last: (0, 0)),
    )
    return pl.pallas_call(
        fused_cgraph_kernel,
        out_shape=jax.ShapeDtypeStruct((B, H), jnp.float32),
        grid_spec=grid_spec,
        compiler_params=pltpu.CompilerParams(dimension_semantics=("arbitrary",)),
    )(last_idx, feat, adj, fp["w_emb"], fp["b_emb"], fp["w1"], fp["b1"], fp["w2"], fp["b2"])


# ----------------------------- parameters -----------------------------
def init_params(key):
    ks = jax.random.split(key, 8)
    sc = 0.1
    return {
        "w_op": sc * jax.random.normal(ks[0], (VOCAB, D_OP), jnp.float32),
        "w_sh": sc * jax.random.normal(ks[1], (S, D_SH), jnp.float32),
        "b_sh": sc * jax.random.normal(ks[2], (1, D_SH), jnp.float32),
        "w_k": sc * jax.random.normal(ks[3], (KF, D_K), jnp.float32),
        "b_k": sc * jax.random.normal(ks[4], (1, D_K), jnp.float32),
        "ws1": sc * jax.random.normal(ks[5], (D_IN, H), jnp.float32),
        "wn1": sc * jax.random.normal(ks[6], (D_IN, H), jnp.float32),
        "b1": jnp.zeros((1, H), jnp.float32),
        "ws2": sc * jax.random.normal(ks[7], (H, H), jnp.float32),
        "wn2": sc * jax.random.normal(jax.random.fold_in(key, 99), (H, H), jnp.float32),
        "b2": jnp.zeros((1, H), jnp.float32),
    }


def fuse_params(p):
    """One-time host-side weight fusion (block-diagonal embed weight, stacked GNN weights)."""
    w_blk = jnp.zeros((F_IN, D_IN), jnp.float32)
    w_blk = w_blk.at[:VOCAB, :D_OP].set(p["w_op"])
    w_blk = w_blk.at[VOCAB:VOCAB + S, D_OP:D_OP + D_SH].set(p["w_sh"])
    w_blk = w_blk.at[VOCAB + S:, D_OP + D_SH:].set(p["w_k"])
    b_blk = jnp.concatenate([jnp.zeros((1, D_OP), jnp.float32), p["b_sh"], p["b_k"]], axis=-1)
    return {
        "w_emb": w_blk,                                           # [F_IN, D_IN]
        "b_emb": b_blk,                                           # [1, D_IN]
        "w1": jnp.concatenate([p["ws1"], p["wn1"]], axis=0),      # [2*D_IN, H]  (rows: self | neigh)
        "b1": p["b1"],
        "w2": jnp.concatenate([p["ws2"], p["wn2"]], axis=0),      # [2*H, H]
        "b2": p["b2"],
    }


# ----------------------------- host-side glue -----------------------------
def _build_block_adj(edge_tsr_list):
    """Block-diagonal raw adjacency [B*N, B*N] built once on host (ragged edge lists)."""
    a = np.zeros((BN, BN), np.float32)
    for b, edges in enumerate(edge_tsr_list):
        e = np.asarray(edges)
        a[b * N + e[1], b * N + e[0]] = 1.0         # dst receives from src
    return jnp.asarray(a)


# ----------------------------- CGraphEmbedding.forward -----------------------------
def cgraph_embedding_forward(fused_params,
                             regular_node_inds, regular_node_shapes,
                             weighted_node_inds, weighted_node_shapes,
                             weighted_node_kernels, weighted_node_bias,
                             edge_tsr_list, batch_last_node_idx_list,
                             index=None, ext_feat=None):
    # TODO(synk): `index` selection and `ext_feat`/eigvecs path are unused when None
    # (as in this call), so they are not implemented.

    # --- glue: fused per-node feature [B*N, VOCAB+S+KF] (regular nodes first, then weighted)
    node_inds = jnp.concatenate([regular_node_inds, weighted_node_inds], axis=1)       # [B, N]
    onehot = jax.nn.one_hot(node_inds, VOCAB, dtype=jnp.float32)                        # [B, N, VOCAB]
    shapes = jnp.concatenate([regular_node_shapes, weighted_node_shapes], axis=1)       # [B, N, S]
    wtd_kf = jnp.concatenate([weighted_node_kernels,
                              weighted_node_bias[..., None]], axis=-1)                  # [B, N_WTD, KF]
    kfeat = jnp.concatenate([jnp.zeros((B, N_REG, KF), jnp.float32), wtd_kf], axis=1)   # [B, N, KF]
    feat = jnp.concatenate([onehot, shapes, kfeat], axis=-1).reshape(BN, F_IN)

    # --- glue: block-diagonal adjacency (normalization happens inside the kernel)
    adj = _build_block_adj(edge_tsr_list)                                               # [BN, BN]

    # --- glue: last valid node index per graph -> SMEM scalar prefetch
    last_idx = jnp.asarray(batch_last_node_idx_list, jnp.int32)                         # [B]

    # --- single fused Pallas kernel: embed -> 2-layer GNN -> masked mean pool
    return _call_fused(last_idx, feat, adj, fused_params)                               # [B, H]


# ----------------------------- main -----------------------------
if __name__ == "__main__":
    key = jax.random.PRNGKey(0)
    k_in = jax.random.split(key, 6)

    params = init_params(jax.random.fold_in(key, 1234))
    fused_params = fuse_params(params)

    regular_node_inds = jax.random.randint(k_in[0], (B, N_REG), 0, VOCAB, dtype=jnp.int32)
    regular_node_shapes = jax.random.uniform(k_in[1], (B, N_REG, S), jnp.float32)
    weighted_node_inds = jax.random.randint(k_in[2], (B, N_WTD), 0, VOCAB, dtype=jnp.int32)
    weighted_node_shapes = jax.random.uniform(k_in[3], (B, N_WTD, S), jnp.float32)
    weighted_node_kernels = jax.random.uniform(k_in[4], (B, N_WTD, 2), jnp.float32, 1.0, 7.0)
    weighted_node_bias = jax.random.bernoulli(k_in[5], 0.5, (B, N_WTD)).astype(jnp.float32)

    # graph 0 uses nodes 0..7 ; graph 1 uses nodes 0..5 (rest are padding)
    edge_tsr_list = [
        jnp.array([[0, 1, 2, 3, 4, 5, 6, 0],
                   [1, 2, 3, 4, 5, 6, 7, 7]], dtype=jnp.int32),
        jnp.array([[0, 1, 2, 3, 4, 1],
                   [1, 2, 3, 4, 5, 5]], dtype=jnp.int32),
    ]
    batch_last_node_idx_list = [7, 5]

    out = cgraph_embedding_forward(
        fused_params,
        regular_node_inds, regular_node_shapes,
        weighted_node_inds, weighted_node_shapes,
        weighted_node_kernels, weighted_node_bias,
        edge_tsr_list, batch_last_node_idx_list,
        index=None, ext_feat=None)

    out = jax.block_until_ready(out)
    assert out.shape == (B, H) and out.dtype == jnp.float32
    assert bool(jnp.all(jnp.isfinite(out)))
    print("KERNEL_OK")
</pallas_src>

<mosaic_0001>
module attributes {stable_mosaic.version = 11 : i64} {
  func.func @fused_cgraph_kernel(%arg0: i32, %arg1: memref<2xi32, #tpu.memory_space<smem>>, %arg2: memref<16x25xf32, #tpu.memory_space<vmem>>, %arg3: memref<16x16xf32, #tpu.memory_space<vmem>>, %arg4: memref<25x32xf32, #tpu.memory_space<vmem>>, %arg5: memref<1x32xf32, #tpu.memory_space<vmem>>, %arg6: memref<64x32xf32, #tpu.memory_space<vmem>>, %arg7: memref<1x32xf32, #tpu.memory_space<vmem>>, %arg8: memref<64x32xf32, #tpu.memory_space<vmem>>, %arg9: memref<1x32xf32, #tpu.memory_space<vmem>>, %arg10: memref<2x32xf32, #tpu.memory_space<vmem>>) attributes {dimension_semantics = [#tpu.dimension_semantics<arbitrary>], iteration_bounds = array<i64: 1>, scalar_prefetch = 1 : i64, scratch_operands = 0 : i64, tpu.core_type = #tpu.core_type<tc>, window_params = [{pipeline_mode = #tpu.pipeline_mode<synchronous>, transform_indices = @transform_0, window_bounds = array<i64: 16, 25>}, {pipeline_mode = #tpu.pipeline_mode<synchronous>, transform_indices = @transform_1, window_bounds = array<i64: 16, 16>}, {pipeline_mode = #tpu.pipeline_mode<synchronous>, transform_indices = @transform_2, window_bounds = array<i64: 25, 32>}, {pipeline_mode = #tpu.pipeline_mode<synchronous>, transform_indices = @transform_3, window_bounds = array<i64: 1, 32>}, {pipeline_mode = #tpu.pipeline_mode<synchronous>, transform_indices = @transform_4, window_bounds = array<i64: 64, 32>}, {pipeline_mode = #tpu.pipeline_mode<synchronous>, transform_indices = @transform_5, window_bounds = array<i64: 1, 32>}, {pipeline_mode = #tpu.pipeline_mode<synchronous>, transform_indices = @transform_6, window_bounds = array<i64: 64, 32>}, {pipeline_mode = #tpu.pipeline_mode<synchronous>, transform_indices = @transform_7, window_bounds = array<i64: 1, 32>}, {pipeline_mode = #tpu.pipeline_mode<synchronous>, transform_indices = @transform_8, window_bounds = array<i64: 2, 32>}]} {
    %c0 = arith.constant 0 : index
    %c0_0 = arith.constant 0 : index
    %0 = vector.load %arg2[%c0, %c0_0] : memref<16x25xf32, #tpu.memory_space<vmem>>, vector<16x25xf32>
    %c0_1 = arith.constant 0 : index
    %c0_2 = arith.constant 0 : index
    %1 = vector.load %arg3[%c0_1, %c0_2] : memref<16x16xf32, #tpu.memory_space<vmem>>, vector<16x16xf32>
    %cst = arith.constant dense<0.000000e+00> : vector<16xf32>
    %2 = vector.multi_reduction <add>, %1, %cst [1] : vector<16x16xf32> to vector<16xf32>
    %3 = vector.shape_cast %2 : vector<16xf32> to vector<16x1xf32>
    %cst_3 = arith.constant 1.000000e+00 : f32
    %4 = vector.broadcast %cst_3 : f32 to vector<16x1xf32>
    %5 = arith.maximumf %3, %4 : vector<16x1xf32>
    %6 = tpu.reciprocal %5 : vector<16x1xf32> -> vector<16x1xf32>
    %7 = vector.broadcast %6 : vector<16x1xf32> to vector<16x16xf32>
    %8 = arith.mulf %1, %7 : vector<16x16xf32>
    %c0_4 = arith.constant 0 : index
    %c0_5 = arith.constant 0 : index
    %9 = vector.load %arg4[%c0_4, %c0_5] : memref<25x32xf32, #tpu.memory_space<vmem>>, vector<25x32xf32>
    %cst_6 = arith.constant dense<0.000000e+00> : vector<16x32xf32>
    %10 = tpu.matmul %0, %9, %cst_6 {dimension_numbers = #tpu.dot_dimension_numbers<[1], [0], [0], [1], [0, 0, 1, 1], [], []>} : vector<16x25xf32>, vector<25x32xf32>, vector<16x32xf32> -> vector<16x32xf32>
    %c0_7 = arith.constant 0 : index
    %c0_8 = arith.constant 0 : index
    %11 = vector.load %arg5[%c0_7, %c0_8] : memref<1x32xf32, #tpu.memory_space<vmem>>, vector<1x32xf32>
    %12 = vector.broadcast %11 : vector<1x32xf32> to vector<16x32xf32>
    %13 = arith.addf %10, %12 : vector<16x32xf32>
    %cst_9 = arith.constant dense<0.000000e+00> : vector<16x32xf32>
    %14 = tpu.matmul %8, %13, %cst_9 {dimension_numbers = #tpu.dot_dimension_numbers<[1], [0], [0], [1], [0, 0, 1, 1], [], []>} : vector<16x16xf32>, vector<16x32xf32>, vector<16x32xf32> -> vector<16x32xf32>
    %15 = tpu.concatenate %13, %14 in 1 : vector<16x32xf32>, vector<16x32xf32> -> vector<16x64xf32>
    %c0_10 = arith.constant 0 : index
    %c0_11 = arith.constant 0 : index
    %16 = vector.load %arg6[%c0_10, %c0_11] : memref<64x32xf32, #tpu.memory_space<vmem>>, vector<64x32xf32>
    %cst_12 = arith.constant dense<0.000000e+00> : vector<16x32xf32>
    %17 = tpu.matmul %15, %16, %cst_12 {dimension_numbers = #tpu.dot_dimension_numbers<[1], [0], [0], [1], [0, 0, 1, 1], [], []>} : vector<16x64xf32>, vector<64x32xf32>, vector<16x32xf32> -> vector<16x32xf32>
    %c0_13 = arith.constant 0 : index
    %c0_14 = arith.constant 0 : index
    %18 = vector.load %arg7[%c0_13, %c0_14] : memref<1x32xf32, #tpu.memory_space<vmem>>, vector<1x32xf32>
    %19 = vector.broadcast %18 : vector<1x32xf32> to vector<16x32xf32>
    %20 = arith.addf %17, %19 : vector<16x32xf32>
    %cst_15 = arith.constant 0.000000e+00 : f32
    %21 = vector.broadcast %cst_15 : f32 to vector<16x32xf32>
    %22 = arith.maximumf %20, %21 : vector<16x32xf32>
    %cst_16 = arith.constant dense<0.000000e+00> : vector<16x32xf32>
    %23 = tpu.matmul %8, %22, %cst_16 {dimension_numbers = #tpu.dot_dimension_numbers<[1], [0], [0], [1], [0, 0, 1, 1], [], []>} : vector<16x16xf32>, vector<16x32xf32>, vector<16x32xf32> -> vector<16x32xf32>
    %24 = tpu.concatenate %22, %23 in 1 : vector<16x32xf32>, vector<16x32xf32> -> vector<16x64xf32>
    %c0_17 = arith.constant 0 : index
    %c0_18 = arith.constant 0 : index
    %25 = vector.load %arg8[%c0_17, %c0_18] : memref<64x32xf32, #tpu.memory_space<vmem>>, vector<64x32xf32>
    %cst_19 = arith.constant dense<0.000000e+00> : vector<16x32xf32>
    %26 = tpu.matmul %24, %25, %cst_19 {dimension_numbers = #tpu.dot_dimension_numbers<[1], [0], [0], [1], [0, 0, 1, 1], [], []>} : vector<16x64xf32>, vector<64x32xf32>, vector<16x32xf32> -> vector<16x32xf32>
    %c0_20 = arith.constant 0 : index
    %c0_21 = arith.constant 0 : index
    %27 = vector.load %arg9[%c0_20, %c0_21] : memref<1x32xf32, #tpu.memory_space<vmem>>, vector<1x32xf32>
    %28 = vector.broadcast %27 : vector<1x32xf32> to vector<16x32xf32>
    %29 = arith.addf %26, %28 : vector<16x32xf32>
    %cst_22 = arith.constant 0.000000e+00 : f32
    %30 = vector.broadcast %cst_22 : f32 to vector<16x32xf32>
    %31 = arith.maximumf %29, %30 : vector<16x32xf32>
    %32 = tpu.iota {dimensions = array<i32: 0>} : vector<16x32xi32>
    %c0_23 = arith.constant 0 : index
    %33 = memref.load %arg1[%c0_23] : memref<2xi32, #tpu.memory_space<smem>>
    %c0_i32 = arith.constant 0 : i32
    %34 = vector.broadcast %c0_i32 : i32 to vector<16x32xi32>
    %35 = arith.cmpi sge, %32, %34 : vector<16x32xi32>
    %c0_i32_24 = arith.constant 0 : i32
    %36 = arith.addi %c0_i32_24, %33 : i32
    %37 = vector.broadcast %36 : i32 to vector<16x32xi32>
    %38 = arith.cmpi sle, %32, %37 : vector<16x32xi32>
    %39 = arith.andi %35, %38 : vector<16x32xi1>
    %c1_i32 = arith.constant 1 : i32
    %40 = arith.addi %33, %c1_i32 : i32
    %41 = arith.sitofp %40 : i32 to f32
    %42 = arith.extui %39 : vector<16x32xi1> to vector<16x32xi32>
    %43 = arith.sitofp %42 : vector<16x32xi32> to vector<16x32xf32>
    %cst_25 = arith.constant 1.000000e+00 : f32
    %44 = arith.divf %cst_25, %41 : f32
    %45 = vector.broadcast %44 : f32 to vector<16x32xf32>
    %46 = arith.mulf %43, %45 : vector<16x32xf32>
    %47 = arith.mulf %31, %46 : vector<16x32xf32>
    %cst_26 = arith.constant dense<0.000000e+00> : vector<32xf32>
    %48 = vector.multi_reduction <add>, %47, %cst_26 [0] : vector<16x32xf32> to vector<32xf32>
    %49 = vector.shape_cast %48 : vector<32xf32> to vector<1x32xf32>
    %c1 = arith.constant 1 : index
    %50 = memref.load %arg1[%c1] : memref<2xi32, #tpu.memory_space<smem>>
    %c8_i32 = arith.constant 8 : i32
    %51 = vector.broadcast %c8_i32 : i32 to vector<16x32xi32>
    %52 = arith.cmpi sge, %32, %51 : vector<16x32xi32>
    %c8_i32_27 = arith.constant 8 : i32
    %53 = arith.addi %c8_i32_27, %50 : i32
    %54 = vector.broadcast %53 : i32 to vector<16x32xi32>
    %55 = arith.cmpi sle, %32, %54 : vector<16x32xi32>
    %56 = arith.andi %52, %55 : vector<16x32xi1>
    %c1_i32_28 = arith.constant 1 : i32
    %57 = arith.addi %50, %c1_i32_28 : i32
    %58 = arith.sitofp %57 : i32 to f32
    %59 = arith.extui %56 : vector<16x32xi1> to vector<16x32xi32>
    %60 = arith.sitofp %59 : vector<16x32xi32> to vector<16x32xf32>
    %cst_29 = arith.constant 1.000000e+00 : f32
    %61 = arith.divf %cst_29, %58 : f32
    %62 = vector.broadcast %61 : f32 to vector<16x32xf32>
    %63 = arith.mulf %60, %62 : vector<16x32xf32>
    %64 = arith.mulf %31, %63 : vector<16x32xf32>
    %cst_30 = arith.constant dense<0.000000e+00> : vector<32xf32>
    %65 = vector.multi_reduction <add>, %64, %cst_30 [0] : vector<16x32xf32> to vector<32xf32>
    %66 = vector.shape_cast %65 : vector<32xf32> to vector<1x32xf32>
    %67 = tpu.concatenate %49, %66 in 0 : vector<1x32xf32>, vector<1x32xf32> -> vector<2x32xf32>
    %c0_31 = arith.constant 0 : index
    %c0_32 = arith.constant 0 : index
    %68 = vector.load %arg10[%c0_31, %c0_32] : memref<2x32xf32, #tpu.memory_space<vmem>>, vector<2x32xf32>
    tpu.vector_store %arg10[%c0_31, %c0_32], %67 {strides = array<i32>} : memref<2x32xf32, #tpu.memory_space<vmem>>, vector<2x32xf32>,
    return
  }
  func.func @transform_0(%arg0: i32, %arg1: memref<2xi32, #tpu.memory_space<smem>>) -> (i32, i32) {
    %c0_i32 = arith.constant 0 : i32
    %c0_i32_0 = arith.constant 0 : i32
    %c0_i32_1 = arith.constant 0 : i32
    return %c0_i32, %c0_i32_0 : i32, i32
  }
  func.func @transform_1(%arg0: i32, %arg1: memref<2xi32, #tpu.memory_space<smem>>) -> (i32, i32) {
    %c0_i32 = arith.constant 0 : i32
    %c0_i32_0 = arith.constant 0 : i32
    %c0_i32_1 = arith.constant 0 : i32
    return %c0_i32, %c0_i32_0 : i32, i32
  }
  func.func @transform_2(%arg0: i32, %arg1: memref<2xi32, #tpu.memory_space<smem>>) -> (i32, i32) {
    %c0_i32 = arith.constant 0 : i32
    %c0_i32_0 = arith.constant 0 : i32
    %c0_i32_1 = arith.constant 0 : i32
    return %c0_i32, %c0_i32_0 : i32, i32
  }
  func.func @transform_3(%arg0: i32, %arg1: memref<2xi32, #tpu.memory_space<smem>>) -> (i32, i32) {
    %c0_i32 = arith.constant 0 : i32
    %c0_i32_0 = arith.constant 0 : i32
    %c0_i32_1 = arith.constant 0 : i32
    return %c0_i32, %c0_i32_0 : i32, i32
  }
  func.func @transform_4(%arg0: i32, %arg1: memref<2xi32, #tpu.memory_space<smem>>) -> (i32, i32) {
    %c0_i32 = arith.constant 0 : i32
    %c0_i32_0 = arith.constant 0 : i32
    %c0_i32_1 = arith.constant 0 : i32
    return %c0_i32, %c0_i32_0 : i32, i32
  }
  func.func @transform_5(%arg0: i32, %arg1: memref<2xi32, #tpu.memory_space<smem>>) -> (i32, i32) {
    %c0_i32 = arith.constant 0 : i32
    %c0_i32_0 = arith.constant 0 : i32
    %c0_i32_1 = arith.constant 0 : i32
    return %c0_i32, %c0_i32_0 : i32, i32
  }
  func.func @transform_6(%arg0: i32, %arg1: memref<2xi32, #tpu.memory_space<smem>>) -> (i32, i32) {
    %c0_i32 = arith.constant 0 : i32
    %c0_i32_0 = arith.constant 0 : i32
    %c0_i32_1 = arith.constant 0 : i32
    return %c0_i32, %c0_i32_0 : i32, i32
  }
  func.func @transform_7(%arg0: i32, %arg1: memref<2xi32, #tpu.memory_space<smem>>) -> (i32, i32) {
    %c0_i32 = arith.constant 0 : i32
    %c0_i32_0 = arith.constant 0 : i32
    %c0_i32_1 = arith.constant 0 : i32
    return %c0_i32, %c0_i32_0 : i32, i32
  }
  func.func @transform_8(%arg0: i32, %arg1: memref<2xi32, #tpu.memory_space<smem>>) -> (i32, i32) {
    %c0_i32 = arith.constant 0 : i32
    %c0_i32_0 = arith.constant 0 : i32
    %c0_i32_1 = arith.constant 0 : i32
    return %c0_i32, %c0_i32_0 : i32, i32
  }
}

</mosaic_0001>

<bundles_post_ra>
// kernel: tpu_custom_call.1
= control target key start
LH: loop header
LB: loop body
LE: loop exit
PB: predicated region body
PF: predicated region fallthrough
CT: control target
= control target key end

     0   :  { %s947_s0 = inlined_call_operand.vmem [shape: s32[2], index: 0, kind: input, shape index: {}]   ;;  %s948_s1 = inlined_call_operand.vmem [shape: f32[16,25], index: 1, kind: input, shape index: {}]   ;;  %s949_s2 = inlined_call_operand.vmem [shape: f32[16,16], index: 2, kind: input, shape index: {}]   ;;  %s950_s3 = inlined_call_operand.vmem [shape: f32[25,32], index: 3, kind: input, shape index: {}]   ;;  %s951_s4 = inlined_call_operand.vmem [shape: f32[1,32], index: 4, kind: input, shape index: {}]   ;;  %s952_s5 = inlined_call_operand.vmem [shape: f32[64,32], index: 5, kind: input, shape index: {}]   ;;  %s953_s6 = inlined_call_operand.vmem [shape: f32[1,32], index: 6, kind: input, shape index: {}]   ;;  %s954_s7 = inlined_call_operand.vmem [shape: f32[64,32], index: 7, kind: input, shape index: {}]   ;;  %s955_s8 = inlined_call_operand.vmem [shape: f32[1,32], index: 8, kind: input, shape index: {}]   ;;  %s956_s9 = inlined_call_operand.hbm [shape: f32[2,32], index: 9, kind: output, shape index: {}]  }
   0x1   :  { %s14_s11 = sshll.u32 %s947_s0, 4  ;;  %s15_s11 = int_to_ptr.vmem [resolvable:$true] %s14_s11 }
   0x2   :  { %s739_s12 = scalar_lea.vmem %s15_s11, 16  ;;  %p744_p1 = scmp.lt.s32.totalorder %s15_s11, %s15_s11 }
   0x3   :  { %p740_p0 = scmp.ne.s32.totalorder %s15_s11, %s739_s12  ;;  %p745_p2 = scmp.lt.s32.totalorder %s739_s12, %s739_s12 }
   0x5   :  { %p746_p3 = por %p745_p2, %p744_p1 }
   0x7   :  { %p747_p4 = pnand %p746_p3, %p740_p0 }
   0x9   :  { %750 = shalt.err (!%p747_p4)  }
   0xa   :  { %s775_s13 = smov [#allocation3]  }
   0xb   :  { %17 = dma.vmem_to_smem %s15_s11, 16, %s775_s13, [#allocation2] }
   0xc   :  { %771 = dma.done.wait [#allocation2], 16 }
   0xd   :  { %772 = vsyncadd [#allocation2], 4294967280 }
   0xe   :  { %19 = sfence }
   0xf   :  { %v57_v0 = vld [vmem:[%s950_s3 + $0x18] sm:$0x1]  ;;  %vm72_vm0 = vcmask 1040384   ;;  %v56_v1 = vld [vmem:[%s950_s3 + $0x10] sm:$0xff]  ;;  %vm65_vm1 = vcmask 203776   ;;  %v55_v2 = vld [vmem:[%s950_s3 + $0x8] sm:$0xff] }
  0x10   :  { %660 = vmatprep.subr.msk.mxu0 %vm72_vm0, %v57_v0  ;;  %v37_v3 = vld [vmem:[%s948_s1] sm:$0xff]  ;;  %vm41_vm2 = vcmask 130048   ;;  %v40_v5 = vld [vmem:[%s949_s2 + $0x8] sm:$0xff] }
  0x11   :  { %661 = vmatpush3.msk.msra.mxu0 %vm72_vm0, %v57_v0  ;;  %668 = vmatprep.mubr.msk.f32.mxu0 %vm65_vm1, %v37_v3  ;;  %v39_v4 = vld [vmem:[%s949_s2] sm:$0xff] }
  0x12   :  { %20 = vsyncpa [#allocation5], 0  ;;  %662 = vmatprep.subr.mxu0 %v56_v1  ;;  %v42_v6 = vsel %vm41_vm2, %v39_v4, 0.0  ;;  %v54_v7 = vld [vmem:[%s950_s3] sm:$0xff]  ;;  %v45_v8 = vsel %vm41_vm2, %v40_v5, 0.0  ;;  %v38_v9 = vld [vmem:[%s948_s1 + $0x8] sm:$0xff]  ;;  %v525_v62 = vlaneseq }
  0x13   :  { %663 = vmatpush3.msra.mxu0 %v56_v1  ;;  %43 = vadd.xlane.f32.xlu0 %v42_v6  ;;  %v608_v16 = vld [vmem:[%s951_s4] ss:$0 sm:$0xff]  ;;  %v250_v23 = vld [vmem:[%s952_s5 + $0x38] sm:$0xff]  ;;  %v249_v24 = vld [vmem:[%s952_s5 + $0x30] sm:$0xff]  ;;  %s776_s21 = smov 32   ;;  %vm240_vm3 = vcmask 261120  }
  0x14   :  { %664 = vmatprep.subr.mxu0 %v55_v2  ;;  %v248_v25 = vld [vmem:[%s952_s5 + $0x28] sm:$0xff]  ;;  %v247_v26 = vld [vmem:[%s952_s5 + $0x20] sm:$0xff]  ;;  %v246_v27 = vld [vmem:[%s952_s5 + $0x18] sm:$0xff]  ;;  %vm258_vm4 = vcmask 523264   ;;  %s926_s13 = sld [smem:[#allocation3]]  ;;  %v526_v63 = vshrl.u32 %v525_v62, 7 }
  0x15   :  { %665 = vmatpush3.msra.mxu0 %v55_v2  ;;  %v245_v28 = vld [vmem:[%s952_s5 + $0x10] sm:$0xff]  ;;  %v244_v29 = vld [vmem:[%s952_s5 + $0x8] sm:$0xff]  ;;  %v243_v30 = vld [vmem:[%s952_s5] sm:$0xff]  ;;  %s624_s14 = sld [smem:[#allocation3 + $0x1]]  ;;  %vm592_vm8 = vcmask 254976  }
  0x16   :  { %666 = vmatprep.subr.mxu0 %v54_v7  ;;  %v614_v37 = vld [vmem:[%s953_s6] ss:$0 sm:$0xff]  ;;  %v434_v44 = vld [vmem:[%s954_s7 + $0x38] sm:$0xff]  ;;  %v433_v45 = vld [vmem:[%s954_s7 + $0x30] sm:$0xff]  ;;  %v527_v0 = vadd.s32 8, %v526_v63 }
  0x17   :  { %667 = vmatpush3.msra.mxu0 %v54_v7  ;;  %46 = vadd.xlane.f32.xlu0 %v45_v8  ;;  %v432_v46 = vld [vmem:[%s954_s7 + $0x28] sm:$0xff]  ;;  %v431_v47 = vld [vmem:[%s954_s7 + $0x20] sm:$0xff]  ;;  %v430_v48 = vld [vmem:[%s954_s7 + $0x18] sm:$0xff] }
  0x18   :  { %669 = vmatmul.mubr.msk.f32.vlgmr.msra.gmra.mxu0 %vm65_vm1, %v38_v9  ;;  %704 = vmatprep.subr.mxu0 %v434_v44  ;;  %v429_v49 = vld [vmem:[%s954_s7 + $0x10] sm:$0xff]  ;;  %v428_v50 = vld [vmem:[%s954_s7 + $0x8] sm:$0xff]  ;;  %v427_v51 = vld [vmem:[%s954_s7] sm:$0xff] }
  0x19   :  { %705 = vmatpush3.msra.mxu0 %v434_v44  ;;  %v619_v3 = vld [vmem:[%s955_s8] ss:$0 sm:$0xff]  ;;  %s778_s8 = smov [#allocation4]  }
  0x1a   :  { %706 = vmatprep.subr.mxu0 %v433_v45  ;;  %s536_s15 = sadd.s32 1, %s926_s13  ;;  %v531_v1 = vstv %s926_s13  ;;  %s600_s5 = sshll.u32 %s778_s8, 4  ;;  %s601_s5 = int_to_ptr.vmem [resolvable:$true] %s600_s5 }
  0x1b   :  { %707 = vmatpush3.msra.mxu0 %v433_v45  ;;  %s537_s16 = scvt.s32.f32 %s536_s15  ;;  %s568_s0 = sadd.s32 1, %s624_s14  ;;  %vm533_vm5 = vcmp.le.s32.totalorder %v527_v0, %v531_v1  ;;  %vm532_vm7 = vcmp.le.s32.totalorder %v526_v63, %v531_v1 }
  0x1c   :  { %708 = vmatprep.subr.mxu0 %v432_v46  ;;  %s569_s17 = scvt.s32.f32 %s568_s0  ;;  %s562_s7 = sadd.s32 8, %s624_s14 }
  0x1d   :  { %709 = vmatpush3.msra.mxu0 %v432_v46  ;;  %v542_v53 = vstv %s537_s16  ;;  %v563_v2 = vstv %s562_s7  ;;  %s751_s22 = scalar_lea.vmem %s601_s5, 32  ;;  %p756_p6 = scmp.lt.s32.totalorder %s601_s5, %s601_s5 }
  0x1e   :  { %710 = vmatprep.subr.mxu0 %v431_v47  ;;  %v574_v55 = vstv %s569_s17  ;;  %vm565_vm6 = vcmp.le.s32.totalorder %v527_v0, %v563_v2  ;;  %p752_p5 = scmp.ne.s32.totalorder %s601_s5, %s751_s22  ;;  %p757_p7 = scmp.lt.s32.totalorder %s751_s22, %s751_s22 }
  0x1f   :  { %711 = vmatpush3.msra.mxu0 %v431_v47 }
  0x20   :  { %712 = vmatprep.subr.mxu0 %v430_v48  ;;  %p758_p8 = por %p757_p7, %p756_p6 }
  0x21   :  { %713 = vmatpush3.msra.mxu0 %v430_v48 }
  0x22   :  { %714 = vmatprep.subr.mxu0 %v429_v49  ;;  %p759_p9 = pnand %p758_p8, %p752_p5 }
  0x23   :  { %715 = vmatpush3.msra.mxu0 %v429_v49 }
  0x24   :  { %716 = vmatprep.subr.mxu0 %v428_v50 }
  0x25   :  { %717 = vmatpush3.msra.mxu0 %v428_v50 }
  0x26   :  { %718 = vmatprep.subr.mxu0 %v427_v51 }
  0x27   :  { %719 = vmatpush3.msra.mxu0 %v427_v51 }
  0x9c   :  { %v44_v10 = vpop.xlane.xlu0 %43 }
  0x9d   :  { %v48_v11 = vmax.f32 %v44_v10, 1.0 }
  0x9f   :  { %731 = vrcp.f32 %v48_v11 }
  0xa0   :  { %v47_v14 = vpop.xlane.xlu0 %46 }
  0xa1   :  { %v49_v15 = vmax.f32 %v47_v14, 1.0 }
  0xa3   :  { %733 = vrcp.f32 %v49_v15 }
  0xa4   :  { %735 = vrcp.f32 %v542_v53 }
  0xa5   :  { %737 = vrcp.f32 %v574_v55 }
  0xac   :  { %v732_v12 = vpop.eup %731 }
  0xad   :  { %v52_v13 = vmul.f32 %v732_v12, %v39_v4  ;;  %v777_v4 = vmov 0.0  }
  0xae   :  { %v625_v7 = vsel %vm565_vm6, 1.0, %v777_v4  ;;  %v622_v10 = vsel %vm532_vm7, 1.0, %v777_v4 }
  0xaf   :  { %675 = vmatprep.mubr.msk.f32.mxu1 %vm41_vm2, %v52_v13 }
  0xb0   :  { %v734_v17 = vpop.eup %733 }
  0xb1   :  { %v53_v22 = vmul.f32 %v734_v17, %v40_v5  ;;  %v736_v56 = vpop.eup %735  ;;  %v623_v5 = vsel %vm533_vm5, 1.0, %v777_v4 }
  0xb2   :  { %v738_v57 = vpop.eup %737  ;;  %723 = vpush %v736_v56 }
  0xb3   :  { %725 = vpush %v738_v57 }
  0xd8   :  { %v670_v18 = vpop.f32.mrf.mxu0 }
  0xd9   :  { %v148_v19 = vadd.f32 %v670_v18, %v608_v16 }
  0xda   :  { %v142_v20 = vpop.f32.mrf.mxu0 }
  0xdb   :  { %v143_v21 = vadd.f32 %v608_v16, %v142_v20  ;;  %671 = vmatprep.subr.mxu1 %v148_v19 }
  0xdc   :  { %672 = vmatpush3.msra.mxu1 %v148_v19 }
  0xdd   :  { %673 = vmatprep.subr.mxu1 %v143_v21 }
  0xde   :  { %674 = vmatpush3.msra.mxu1 %v143_v21 }
  0xdf   :  { %676 = vmatmul.mubr.msk.f32.vlgmr.msra.gmra.mxu1 %vm41_vm2, %v53_v22  ;;  %678 = vmatprep.subr.mxu1 %v250_v23 }
  0xe0   :  { %679 = vmatpush3.msra.mxu1 %v250_v23 }
  0xe1   :  { %680 = vmatprep.subr.mxu1 %v249_v24 }
  0xe2   :  { %681 = vmatpush3.msra.mxu1 %v249_v24 }
  0xe3   :  { %682 = vmatprep.subr.mxu1 %v248_v25  ;;  %s724_s18 = spop %723 }
  0xe4   :  { %683 = vmatpush3.msra.mxu1 %v248_v25  ;;  %s726_s19 = spop %725  ;;  %v545_v6 = vstv %s724_s18 }
  0xe5   :  { %684 = vmatprep.subr.mxu1 %v247_v26  ;;  %v577_v8 = vstv %s726_s19  ;;  %v547_v12 = vmul.f32 %v623_v5, %v545_v6  ;;  %v546_v16 = vmul.f32 %v622_v10, %v545_v6 }
  0xe6   :  { %685 = vmatpush3.msra.mxu1 %v247_v26  ;;  %v578_v17 = vmul.f32 0.0, %v577_v8 }
  0xe7   :  { %686 = vmatprep.subr.mxu1 %v246_v27 }
  0xe8   :  { %687 = vmatpush3.msra.mxu1 %v246_v27 }
  0xe9   :  { %688 = vmatprep.subr.mxu1 %v245_v28 }
  0xea   :  { %689 = vmatpush3.msra.mxu1 %v245_v28 }
  0xeb   :  { %690 = vmatprep.subr.mxu1 %v244_v29 }
  0xec   :  { %691 = vmatpush3.msra.mxu1 %v244_v29 }
  0xed   :  { %692 = vmatprep.subr.mxu1 %v243_v30 }
  0xee   :  { %693 = vmatpush3.msra.mxu1 %v243_v30 }
 0x19f   :  { %v677_v31 = vpop.f32.mrf.mxu1 }
 0x1a1   :  { %v223_v32 = vpop.f32.mrf.mxu1 }
 0x1a2   :  { %234 = vrot.lane.b32.xlu1 %v223_v32, %s776_s21 }
 0x1a6   :  { %236 = vrot.lane.b32.xlu1 %v677_v31, %s776_s21 }
 0x214   :  { %v235_v33 = vpop.permute.xlu1 %234 }
 0x215   :  { %v241_v34 = vsel %vm240_vm3, %v143_v21, %v235_v33 }
 0x216   :  { %694 = vmatprep.mubr.msk.f32.mxu1 %vm258_vm4, %v241_v34 }
 0x218   :  { %v237_v35 = vpop.permute.xlu1 %236 }
 0x219   :  { %v242_v36 = vsel %vm240_vm3, %v148_v19, %v237_v35 }
 0x21a   :  { %695 = vmatmul.mubr.msk.f32.vlgmr.msra.gmra.mxu1 %vm258_vm4, %v242_v36 }
 0x21b   :  { %701 = vmatprep.mubr.msk.f32.mxu1 %vm41_vm2, %v52_v13  ;;  %v579_v13 = vmul.f32 %v625_v7, %v577_v8 }
 0x2da   :  { %v696_v38 = vpop.f32.mrf.mxu1 }
 0x2db   :  { %v337_v39 = vadd.f32 %v696_v38, %v614_v37 }
 0x2dc   :  { %v331_v40 = vpop.f32.mrf.mxu1 }
 0x2dd   :  { %v341_v41 = vmax.f32 %v337_v39, 0.0  ;;  %v332_v42 = vadd.f32 %v614_v37, %v331_v40 }
 0x2df   :  { %v340_v43 = vmax.f32 %v332_v42, 0.0  ;;  %697 = vmatprep.subr.mxu1 %v341_v41 }
 0x2e0   :  { %698 = vmatpush3.msra.mxu1 %v341_v41 }
 0x2e1   :  { %699 = vmatprep.subr.mxu1 %v340_v43 }
 0x2e2   :  { %700 = vmatpush3.msra.mxu1 %v340_v43 }
 0x2e3   :  { %702 = vmatmul.mubr.msk.f32.vlgmr.msra.gmra.mxu1 %vm41_vm2, %v53_v22 }
 0x3a3   :  { %v703_v52 = vpop.f32.mrf.mxu1 }
 0x3a4   :  { %421 = vrot.lane.b32.xlu1 %v703_v52, %s776_s21 }
 0x3a5   :  { %v408_v54 = vpop.f32.mrf.mxu1 }
 0x3a6   :  { %419 = vrot.lane.b32.xlu0 %v408_v54, %s776_s21 }
 0x416   :  { %v422_v58 = vpop.permute.xlu1 %421 }
 0x417   :  { %v426_v61 = vsel %vm240_vm3, %v341_v41, %v422_v58 }
 0x418   :  { %v420_v59 = vpop.permute.xlu0 %419 }
 0x419   :  { %v425_v60 = vsel %vm240_vm3, %v340_v43, %v420_v59 }
 0x41a   :  { %720 = vmatprep.mubr.msk.f32.mxu0 %vm258_vm4, %v425_v60 }
 0x41b   :  { %721 = vmatmul.mubr.msk.f32.vlgmr.msra.gmra.mxu0 %vm258_vm4, %v426_v61 }
 0x4db   :  { %v722_v9 = vpop.f32.mrf.mxu0 }
 0x4dc   :  { %v520_v11 = vadd.f32 %v722_v9, %v619_v3 }
 0x4dd   :  { %v514_v14 = vpop.f32.mrf.mxu0 }
 0x4de   :  { %v524_v15 = vmax.f32 %v520_v11, 0.0  ;;  %v515_v18 = vadd.f32 %v619_v3, %v514_v14 }
 0x4e0   :  { %v549_v19 = vmul.f32 %v547_v12, %v524_v15  ;;  %v581_v20 = vmul.f32 %v579_v13, %v524_v15  ;;  %v523_v21 = vmax.f32 %v515_v18, 0.0 }
 0x4e2   :  { %v548_v22 = vmul.f32 %v546_v16, %v523_v21  ;;  %v580_v23 = vmul.f32 %v578_v17, %v523_v21  ;;  %v551_v24 = vsel %vm240_vm3, %v549_v19, 0.0  ;;  %v583_v25 = vsel %vm240_vm3, %v581_v20, 0.0 }
 0x4e4   :  { %v550_v26 = vsel %vm240_vm3, %v548_v22, 0.0  ;;  %v582_v27 = vsel %vm240_vm3, %v580_v23, 0.0 }
 0x4e5   :  { %v552_v28 = vadd.f32 %v551_v24, %v550_v26  ;;  %v584_v29 = vadd.f32 %v583_v25, %v582_v27 }
 0x4e7   :  { %v553_v30 = vrot.slane %v552_v28, 4  ;;  %v585_v31 = vrot.slane %v584_v29, 4 }
 0x4e9   :  { %v554_v32 = vadd.f32 %v553_v30, %v552_v28  ;;  %v586_v33 = vadd.f32 %v585_v31, %v584_v29 }
 0x4eb   :  { %v555_v34 = vrot.slane %v554_v32, 2  ;;  %v587_v35 = vrot.slane %v586_v33, 2 }
 0x4ed   :  { %v556_v36 = vadd.f32 %v555_v34, %v554_v32  ;;  %v588_v37 = vadd.f32 %v587_v35, %v586_v33 }
 0x4ef   :  { %v557_v38 = vrot.slane %v556_v36, 1  ;;  %v589_v39 = vrot.slane %v588_v37, 1 }
 0x4f1   :  { %v558_v40 = vadd.f32 %v557_v38, %v556_v36  ;;  %v590_v41 = vadd.f32 %v589_v39, %v588_v37 }
 0x4f3   :  { %v591_v42 = vsel %vm72_vm0, %v558_v40, %v590_v41 }
 0x4f4   :  { %593 = vst.msk [vmem:[#allocation4] sm:$0x3] %vm592_vm8, %v591_v42 }
 0x4f5   :  { %762 = shalt.err (!%p759_p9)
}
 0x4f6   :  { %603 = dma.vmem_to_hbm [thread:$0]  %s601_s5, 32, %s956_s9, [#allocation5]  }
 0x4f7   :  { %773 = dma.done.wait [#allocation5], 32  }
 0x4f8   :  { %774 = vsyncadd [#allocation5], 4294967264 }
 0x4f9   :  { %607 = vsyncpa [#allocation5], 1 }

</bundles_post_ra>
